<compile_context>
chip_gen: v5e
topology: v5e:2x2
jax: 0.10.0
libtpu: 0.0.40
codegen_flags: <defaults>
</compile_context>

<pallas_src>
import functools

import jax
import jax.numpy as jnp
from jax.experimental import pallas as pl
from jax.experimental.pallas import tpu as pltpu

BN_EPS = 1e-5
IN_FEATURES = 20
H1, H2, H3 = 64, 48, 96
OUT_FEATURES = 3
OUT_PAD = 4          # padded output columns (lane-legal: equals full out dim)
MAX_TILE = 2048      # max batch rows per grid step (fits default scoped VMEM)


def _round_up(n, m):
    return pl.cdiv(n, m) * m


def _device_kind():
    try:
        return jax.devices()[0].device_kind.lower()
    except Exception:
        return ""


def _default_bf16_eup():
    # bf16 EUP/VPU path exists on v6e / v7x; v5e (and older) has none.
    kind = _device_kind()
    return ("v6" in kind) or ("v7" in kind)


def _num_tensorcores():
    # v7x has 2 TensorCores per chip; v5e / v6e have 1.
    return 2 if "v7" in _device_kind() else 1


def mlp_kernel(x_ref,
               w1_ref, b1_ref,
               w2_ref, b2_ref,
               w3_ref, b3_ref,
               wo_ref, bo_ref,
               o_ref, *, bf16_eup):
    bf = jnp.bfloat16

    # ---- layer 1: Linear(20->64) [eval-mode BN(64) folded into w1/b1] -> ReLU
    x = x_ref[...]
    if x.dtype != bf:                      # no-op when producer emits bf16
        x = x.astype(bf)
    h = jnp.dot(x, w1_ref[...], preferred_element_type=jnp.float32) + b1_ref[...]
    h = jnp.maximum(h, 0.0)

    # ---- layer 2: Linear(64->48) -> Dropout (eval: identity) -> Tanh ----
    h = jnp.dot(h.astype(bf), w2_ref[...],
                preferred_element_type=jnp.float32) + b2_ref[...]
    if bf16_eup:
        h = jnp.tanh(h.astype(bf))                      # bf16 EUP (v6e/v7x)
    else:
        h = jnp.tanh(h).astype(bf)                      # f32 EUP (v5e)

    # ---- layer 3: Linear(48->96) (weight_scale baked in) -> Sigmoid ----
    h = jnp.dot(h, w3_ref[...], preferred_element_type=jnp.float32) + b3_ref[...]
    if bf16_eup:
        hb = h.astype(bf)
        h = 0.5 * (jnp.tanh(0.5 * hb) + 1.0)            # sigmoid via one tanh
    else:
        h = (0.5 * (jnp.tanh(0.5 * h) + 1.0)).astype(bf)

    # ---- output layer: Linear(96->OUT_PAD), stored bf16 ----
    out = jnp.dot(h, wo_ref[...], preferred_element_type=jnp.float32) + bo_ref[...]
    o_ref[...] = out.astype(o_ref.dtype)


def random_model_forward(x, params, *, out_features=OUT_FEATURES,
                         max_tile=MAX_TILE, bf16_eup=None, n_cores=None):
    if bf16_eup is None:
        bf16_eup = _default_bf16_eup()
    if n_cores is None:
        n_cores = _num_tensorcores()

    (w1, b1, w2, b2, w3, b3, wo, bo) = params
    batch, in_features = x.shape
    out_pad = wo.shape[1]

    # Batch tile: aim for >= n_cores grid steps (so "parallel" shards the grid
    # across TensorCores on v7x); tb rounded to 16 rows (sublane-legal for the
    # bf16 x / out streams).  If the whole batch fits one tile, use a single
    # full-extent block (no edge masking needed).
    target = pl.cdiv(batch, max(1, n_cores))
    tb = min(max_tile, _round_up(target, 16))
    if tb >= batch:
        tb = batch
    grid = (pl.cdiv(batch, tb),)   # ragged edge block handled by Pallas masking

    def resident(a):  # full-array block, constant index_map -> stays in VMEM
        return pl.BlockSpec(a.shape, lambda i: (0, 0))

    flops = 2 * batch * (w1.shape[0] * w1.shape[1] + w2.shape[0] * w2.shape[1]
                         + w3.shape[0] * w3.shape[1] + wo.shape[0] * wo.shape[1])
    transcendentals = batch * (w2.shape[1] + w3.shape[1])
    weight_bytes = sum(int(a.size) * a.dtype.itemsize
                       for a in (w1, b1, w2, b2, w3, b3, wo, bo))
    bytes_accessed = int(batch * (in_features * x.dtype.itemsize + out_pad * 2)
                         + weight_bytes)

    kernel = functools.partial(mlp_kernel, bf16_eup=bool(bf16_eup))

    out = pl.pallas_call(
        kernel,
        out_shape=jax.ShapeDtypeStruct((batch, out_pad), jnp.bfloat16),
        grid_spec=pltpu.PrefetchScalarGridSpec(
            num_scalar_prefetch=0,
            grid=grid,
            in_specs=[pl.BlockSpec((tb, in_features), lambda i: (i, 0)),
                      resident(w1), resident(b1),
                      resident(w2), resident(b2),
                      resident(w3), resident(b3),
                      resident(wo), resident(bo)],
            out_specs=pl.BlockSpec((tb, out_pad), lambda i: (i, 0)),
        ),
        compiler_params=pltpu.CompilerParams(
            dimension_semantics=("parallel",)),
        cost_estimate=pl.CostEstimate(flops=int(flops),
                                      transcendentals=int(transcendentals),
                                      bytes_accessed=bytes_accessed),
    )(x, w1, b1, w2, b2, w3, b3, wo, bo)

    # Tiny (batch, 3) slice + upcast in the wrapper.
    return out[:, :out_features].astype(jnp.float32)


def _linear_init(key, fan_in, fan_out):
    """PyTorch nn.Linear default init: U(-1/sqrt(fan_in), 1/sqrt(fan_in))."""
    kw, kb = jax.random.split(key)
    bound = 1.0 / jnp.sqrt(float(fan_in))
    w = jax.random.uniform(kw, (fan_in, fan_out), jnp.float32, -bound, bound)
    b = jax.random.uniform(kb, (1, fan_out), jnp.float32, -bound, bound)
    return w, b


def make_params(key, input_size=IN_FEATURES, output_size=OUT_FEATURES):
    k1, k2, k3, ko = jax.random.split(key, 4)

    # layer 1: Linear(20->64), BatchNorm1d(64) with params scaled by 1.5.
    w1, b1 = _linear_init(k1, input_size, H1)
    gamma = jnp.ones((1, H1), jnp.float32) * 1.5    # BN weight * weight_scale
    beta = jnp.zeros((1, H1), jnp.float32) * 1.5    # BN bias   * weight_scale
    # Fold eval-mode BN (running_mean=0, running_var=1) into the linear layer.
    scale = gamma / jnp.sqrt(1.0 + BN_EPS)
    w1 = w1 * scale
    b1 = b1 * scale + beta

    # layer 2: Linear(64->48)   (Dropout p=0.3 is identity in eval mode)
    w2, b2 = _linear_init(k2, H1, H2)

    # layer 3: Linear(48->96), params scaled by 0.8
    w3, b3 = _linear_init(k3, H2, H3)
    w3, b3 = w3 * 0.8, b3 * 0.8

    # output layer: Linear(96->3), zero-padded to OUT_PAD output columns
    wo, bo = _linear_init(ko, H3, output_size)
    wo = jnp.pad(wo, ((0, 0), (0, OUT_PAD - output_size)))
    bo = jnp.pad(bo, ((0, 0), (0, OUT_PAD - output_size)))

    # Weights stored in bf16 (MXU-native), biases stay f32.
    cast = functools.partial(jnp.asarray, dtype=jnp.bfloat16)
    return (cast(w1), b1, cast(w2), b2, cast(w3), b3, cast(wo), bo)


def reference_forward(x, params, out_features=OUT_FEATURES, bf16_eup=None):
    """Plain-JAX reference mirroring the kernel's math exactly."""
    if bf16_eup is None:
        bf16_eup = _default_bf16_eup()
    (w1, b1, w2, b2, w3, b3, wo, bo) = params
    bf = jnp.bfloat16
    h = jnp.dot(x.astype(bf), w1, preferred_element_type=jnp.float32) + b1
    h = jnp.maximum(h, 0.0)
    h = jnp.dot(h.astype(bf), w2, preferred_element_type=jnp.float32) + b2
    if bf16_eup:
        h = jnp.tanh(h.astype(bf))
    else:
        h = jnp.tanh(h).astype(bf)
    h = jnp.dot(h, w3, preferred_element_type=jnp.float32) + b3
    if bf16_eup:
        hb = h.astype(bf)
        h = 0.5 * (jnp.tanh(0.5 * hb) + 1.0)
    else:
        h = (0.5 * (jnp.tanh(0.5 * h) + 1.0)).astype(bf)
    out = jnp.dot(h, wo, preferred_element_type=jnp.float32) + bo
    out = out.astype(bf).astype(jnp.float32)    # mirror bf16 output store
    return out[:, :out_features]


if __name__ == "__main__":
    key = jax.random.PRNGKey(0)
    kx, kp, kx2 = jax.random.split(key, 3)

    params = make_params(kp, IN_FEATURES, OUT_FEATURES)

    # Small-shape check (single full-extent block, grid=(1,)).
    batch = 8
    x = jax.random.normal(kx, (batch, IN_FEATURES), jnp.float32).astype(jnp.bfloat16)
    out = jax.block_until_ready(random_model_forward(x, params))
    ref = reference_forward(x, params)
    assert out.shape == (batch, OUT_FEATURES)
    assert jnp.allclose(out, ref, atol=3e-2, rtol=3e-2)

    # Multi-step grid check: ragged batch with NO wrapper-side padding — the
    # last grid step is a Pallas-masked edge block (100 rows = 64 + 36).
    batch2 = 100
    x2 = jax.random.normal(kx2, (batch2, IN_FEATURES), jnp.float32).astype(jnp.bfloat16)
    out2 = jax.block_until_ready(
        random_model_forward(x2, params, max_tile=64))
    ref2 = reference_forward(x2, params)
    assert out2.shape == (batch2, OUT_FEATURES)
    assert jnp.allclose(out2, ref2, atol=3e-2, rtol=3e-2)

    print("KERNEL_OK")
</pallas_src>

<mosaic_0001>
module attributes {stable_mosaic.version = 11 : i64} {
  func.func @mlp_kernel(%arg0: i32, %arg1: memref<8x20xbf16, #tpu.memory_space<vmem>>, %arg2: memref<20x64xbf16, #tpu.memory_space<vmem>>, %arg3: memref<1x64xf32, #tpu.memory_space<vmem>>, %arg4: memref<64x48xbf16, #tpu.memory_space<vmem>>, %arg5: memref<1x48xf32, #tpu.memory_space<vmem>>, %arg6: memref<48x96xbf16, #tpu.memory_space<vmem>>, %arg7: memref<1x96xf32, #tpu.memory_space<vmem>>, %arg8: memref<96x4xbf16, #tpu.memory_space<vmem>>, %arg9: memref<1x4xf32, #tpu.memory_space<vmem>>, %arg10: memref<8x4xbf16, #tpu.memory_space<vmem>>) attributes {dimension_semantics = [#tpu.dimension_semantics<parallel>], iteration_bounds = array<i64: 1>, scalar_prefetch = 0 : i64, scratch_operands = 0 : i64, tpu.core_type = #tpu.core_type<tc>, window_params = [{transform_indices = @transform_0, window_bounds = array<i64: 8, 20>}, {pipeline_mode = #tpu.pipeline_mode<synchronous>, transform_indices = @transform_1, window_bounds = array<i64: 20, 64>}, {pipeline_mode = #tpu.pipeline_mode<synchronous>, transform_indices = @transform_2, window_bounds = array<i64: 1, 64>}, {pipeline_mode = #tpu.pipeline_mode<synchronous>, transform_indices = @transform_3, window_bounds = array<i64: 64, 48>}, {pipeline_mode = #tpu.pipeline_mode<synchronous>, transform_indices = @transform_4, window_bounds = array<i64: 1, 48>}, {pipeline_mode = #tpu.pipeline_mode<synchronous>, transform_indices = @transform_5, window_bounds = array<i64: 48, 96>}, {pipeline_mode = #tpu.pipeline_mode<synchronous>, transform_indices = @transform_6, window_bounds = array<i64: 1, 96>}, {pipeline_mode = #tpu.pipeline_mode<synchronous>, transform_indices = @transform_7, window_bounds = array<i64: 96, 4>}, {pipeline_mode = #tpu.pipeline_mode<synchronous>, transform_indices = @transform_8, window_bounds = array<i64: 1, 4>}, {transform_indices = @transform_9, window_bounds = array<i64: 8, 4>}]} {
    %c0 = arith.constant 0 : index
    %c0_0 = arith.constant 0 : index
    %0 = vector.load %arg1[%c0, %c0_0] : memref<8x20xbf16, #tpu.memory_space<vmem>>, vector<8x20xbf16>
    %c0_1 = arith.constant 0 : index
    %c0_2 = arith.constant 0 : index
    %1 = vector.load %arg2[%c0_1, %c0_2] : memref<20x64xbf16, #tpu.memory_space<vmem>>, vector<20x64xbf16>
    %cst = arith.constant dense<0.000000e+00> : vector<8x64xf32>
    %2 = tpu.matmul %0, %1, %cst {dimension_numbers = #tpu.dot_dimension_numbers<[1], [0], [0], [1], [0, 0, 1, 1], [], []>} : vector<8x20xbf16>, vector<20x64xbf16>, vector<8x64xf32> -> vector<8x64xf32>
    %c0_3 = arith.constant 0 : index
    %c0_4 = arith.constant 0 : index
    %3 = vector.load %arg3[%c0_3, %c0_4] : memref<1x64xf32, #tpu.memory_space<vmem>>, vector<1x64xf32>
    %4 = vector.broadcast %3 : vector<1x64xf32> to vector<8x64xf32>
    %5 = arith.addf %2, %4 : vector<8x64xf32>
    %cst_5 = arith.constant 0.000000e+00 : f32
    %6 = vector.broadcast %cst_5 : f32 to vector<8x64xf32>
    %7 = arith.maximumf %5, %6 : vector<8x64xf32>
    %8 = arith.truncf %7 : vector<8x64xf32> to vector<8x64xbf16>
    %c0_6 = arith.constant 0 : index
    %c0_7 = arith.constant 0 : index
    %9 = vector.load %arg4[%c0_6, %c0_7] : memref<64x48xbf16, #tpu.memory_space<vmem>>, vector<64x48xbf16>
    %cst_8 = arith.constant dense<0.000000e+00> : vector<8x48xf32>
    %10 = tpu.matmul %8, %9, %cst_8 {dimension_numbers = #tpu.dot_dimension_numbers<[1], [0], [0], [1], [0, 0, 1, 1], [], []>} : vector<8x64xbf16>, vector<64x48xbf16>, vector<8x48xf32> -> vector<8x48xf32>
    %c0_9 = arith.constant 0 : index
    %c0_10 = arith.constant 0 : index
    %11 = vector.load %arg5[%c0_9, %c0_10] : memref<1x48xf32, #tpu.memory_space<vmem>>, vector<1x48xf32>
    %12 = vector.broadcast %11 : vector<1x48xf32> to vector<8x48xf32>
    %13 = arith.addf %10, %12 : vector<8x48xf32>
    %14 = math.tanh %13 : vector<8x48xf32>
    %15 = arith.truncf %14 : vector<8x48xf32> to vector<8x48xbf16>
    %c0_11 = arith.constant 0 : index
    %c0_12 = arith.constant 0 : index
    %16 = vector.load %arg6[%c0_11, %c0_12] : memref<48x96xbf16, #tpu.memory_space<vmem>>, vector<48x96xbf16>
    %cst_13 = arith.constant dense<0.000000e+00> : vector<8x96xf32>
    %17 = tpu.matmul %15, %16, %cst_13 {dimension_numbers = #tpu.dot_dimension_numbers<[1], [0], [0], [1], [0, 0, 1, 1], [], []>} : vector<8x48xbf16>, vector<48x96xbf16>, vector<8x96xf32> -> vector<8x96xf32>
    %c0_14 = arith.constant 0 : index
    %c0_15 = arith.constant 0 : index
    %18 = vector.load %arg7[%c0_14, %c0_15] : memref<1x96xf32, #tpu.memory_space<vmem>>, vector<1x96xf32>
    %19 = vector.broadcast %18 : vector<1x96xf32> to vector<8x96xf32>
    %20 = arith.addf %17, %19 : vector<8x96xf32>
    %cst_16 = arith.constant 5.000000e-01 : f32
    %21 = vector.broadcast %cst_16 : f32 to vector<8x96xf32>
    %22 = arith.mulf %21, %20 : vector<8x96xf32>
    %23 = math.tanh %22 : vector<8x96xf32>
    %cst_17 = arith.constant 1.000000e+00 : f32
    %24 = vector.broadcast %cst_17 : f32 to vector<8x96xf32>
    %25 = arith.addf %23, %24 : vector<8x96xf32>
    %cst_18 = arith.constant 5.000000e-01 : f32
    %26 = vector.broadcast %cst_18 : f32 to vector<8x96xf32>
    %27 = arith.mulf %26, %25 : vector<8x96xf32>
    %28 = arith.truncf %27 : vector<8x96xf32> to vector<8x96xbf16>
    %c0_19 = arith.constant 0 : index
    %c0_20 = arith.constant 0 : index
    %29 = vector.load %arg8[%c0_19, %c0_20] : memref<96x4xbf16, #tpu.memory_space<vmem>>, vector<96x4xbf16>
    %cst_21 = arith.constant dense<0.000000e+00> : vector<8x4xf32>
    %30 = tpu.matmul %28, %29, %cst_21 {dimension_numbers = #tpu.dot_dimension_numbers<[1], [0], [0], [1], [0, 0, 1, 1], [], []>} : vector<8x96xbf16>, vector<96x4xbf16>, vector<8x4xf32> -> vector<8x4xf32>
    %c0_22 = arith.constant 0 : index
    %c0_23 = arith.constant 0 : index
    %31 = vector.load %arg9[%c0_22, %c0_23] : memref<1x4xf32, #tpu.memory_space<vmem>>, vector<1x4xf32>
    %32 = vector.broadcast %31 : vector<1x4xf32> to vector<8x4xf32>
    %33 = arith.addf %30, %32 : vector<8x4xf32>
    %34 = arith.truncf %33 : vector<8x4xf32> to vector<8x4xbf16>
    %c0_24 = arith.constant 0 : index
    %c0_25 = arith.constant 0 : index
    %35 = vector.load %arg10[%c0_24, %c0_25] : memref<8x4xbf16, #tpu.memory_space<vmem>>, vector<8x4xbf16>
    tpu.vector_store %arg10[%c0_24, %c0_25], %34 {strides = array<i32>} : memref<8x4xbf16, #tpu.memory_space<vmem>>, vector<8x4xbf16>,
    return
  }
  func.func @transform_0(%arg0: i32) -> (i32, i32) {
    %c0_i32 = arith.constant 0 : i32
    %c0_i32_0 = arith.constant 0 : i32
    return %arg0, %c0_i32 : i32, i32
  }
  func.func @transform_1(%arg0: i32) -> (i32, i32) {
    %c0_i32 = arith.constant 0 : i32
    %c0_i32_0 = arith.constant 0 : i32
    %c0_i32_1 = arith.constant 0 : i32
    return %c0_i32, %c0_i32_0 : i32, i32
  }
  func.func @transform_2(%arg0: i32) -> (i32, i32) {
    %c0_i32 = arith.constant 0 : i32
    %c0_i32_0 = arith.constant 0 : i32
    %c0_i32_1 = arith.constant 0 : i32
    return %c0_i32, %c0_i32_0 : i32, i32
  }
  func.func @transform_3(%arg0: i32) -> (i32, i32) {
    %c0_i32 = arith.constant 0 : i32
    %c0_i32_0 = arith.constant 0 : i32
    %c0_i32_1 = arith.constant 0 : i32
    return %c0_i32, %c0_i32_0 : i32, i32
  }
  func.func @transform_4(%arg0: i32) -> (i32, i32) {
    %c0_i32 = arith.constant 0 : i32
    %c0_i32_0 = arith.constant 0 : i32
    %c0_i32_1 = arith.constant 0 : i32
    return %c0_i32, %c0_i32_0 : i32, i32
  }
  func.func @transform_5(%arg0: i32) -> (i32, i32) {
    %c0_i32 = arith.constant 0 : i32
    %c0_i32_0 = arith.constant 0 : i32
    %c0_i32_1 = arith.constant 0 : i32
    return %c0_i32, %c0_i32_0 : i32, i32
  }
  func.func @transform_6(%arg0: i32) -> (i32, i32) {
    %c0_i32 = arith.constant 0 : i32
    %c0_i32_0 = arith.constant 0 : i32
    %c0_i32_1 = arith.constant 0 : i32
    return %c0_i32, %c0_i32_0 : i32, i32
  }
  func.func @transform_7(%arg0: i32) -> (i32, i32) {
    %c0_i32 = arith.constant 0 : i32
    %c0_i32_0 = arith.constant 0 : i32
    %c0_i32_1 = arith.constant 0 : i32
    return %c0_i32, %c0_i32_0 : i32, i32
  }
  func.func @transform_8(%arg0: i32) -> (i32, i32) {
    %c0_i32 = arith.constant 0 : i32
    %c0_i32_0 = arith.constant 0 : i32
    %c0_i32_1 = arith.constant 0 : i32
    return %c0_i32, %c0_i32_0 : i32, i32
  }
  func.func @transform_9(%arg0: i32) -> (i32, i32) {
    %c0_i32 = arith.constant 0 : i32
    %c0_i32_0 = arith.constant 0 : i32
    return %arg0, %c0_i32 : i32, i32
  }
}

</mosaic_0001>

<bundles_post_ra>
// kernel: tpu_custom_call.1
= control target key start
LH: loop header
LB: loop body
LE: loop exit
PB: predicated region body
PF: predicated region fallthrough
CT: control target
= control target key end

     0   :  { %vm54_vm0 = vcmask 1041408   ;;  %vm50_vm1 = vcmask 162816   ;;  %vm109_vm2 = vcmask 523264   ;;  %vm156_vm3 = vcmask 392192   ;;  %s449_s1 = inlined_call_operand.vmem [shape: bf16[20,64], index: 1, kind: input, shape index: {}]   ;;  %s450_s3 = inlined_call_operand.vmem [shape: bf16[64,48], index: 3, kind: input, shape index: {}]   ;;  %s451_s2 = inlined_call_operand.vmem [shape: f32[1,64], index: 2, kind: input, shape index: {}]   ;;  %s452_s0 = inlined_call_operand.vmem [shape: bf16[8,20], index: 0, kind: input, shape index: {}]   ;;  %s453_s4 = inlined_call_operand.vmem [shape: f32[1,48], index: 4, kind: input, shape index: {}]   ;;  %s454_s6 = inlined_call_operand.vmem [shape: f32[1,96], index: 6, kind: input, shape index: {}]   ;;  %s455_s5 = inlined_call_operand.vmem [shape: bf16[48,96], index: 5, kind: input, shape index: {}]   ;;  %s456_s7 = inlined_call_operand.vmem [shape: bf16[96,4], index: 7, kind: input, shape index: {}]   ;;  %s457_s8 = inlined_call_operand.vmem [shape: f32[1,4], index: 8, kind: input, shape index: {}]   ;;  %s458_s9 = inlined_call_operand.vmem [shape: bf16[8,4], index: 9, kind: output, shape index: {}]  }
   0x1   :  { %v36_v0 = vld [vmem:[%s449_s1 + $0x8] sm:$0x3]  ;;  %v318_v2 = vld [vmem:[%s450_s3 + $0x18] sm:$0xff]  ;;  %v317_v4 = vld [vmem:[%s450_s3 + $0x10] sm:$0xff]  ;;  %vm230_vm4 = vcmask 785408   ;;  %vm248_vm5 = vcmask 27648  }
   0x2   :  { %v46_v1 = vunpack.c.l.b16 %v36_v0  ;;  %117 = vmatpush.bf16.msra.mxu1 %v318_v2  ;;  %v314_v6 = vld [vmem:[%s449_s1] sm:$0xff]  ;;  %v316_v8 = vld [vmem:[%s450_s3 + $0x8] sm:$0xff]  ;;  %v321_v16 = vld [vmem:[%s455_s5 + $0x10] sm:$0xff] }
   0x3   :  { %v33_v7 = vld [vmem:[%s452_s0] sm:$0xf]  ;;  %165 = vmatpush.bf16.msra.mxu2 %v321_v16  ;;  %v320_v17 = vld [vmem:[%s455_s5 + $0x8] sm:$0xff]  ;;  %v325_v27 = vld [vmem:[%s456_s7 + $0x18] sm:$0xff] }
   0x4   :  { %v48_v3 = vpack.c.b16 %v46_v1, %v46_v1  ;;  %v315_v9 = vld [vmem:[%s450_s3] sm:$0xff]  ;;  %v327_v19 = vld [vmem:[%s456_s7 + $0x28] sm:$0xff]  ;;  %v324_v28 = vld [vmem:[%s456_s7 + $0x10] sm:$0xff] }
   0x5   :  { %v328_v10 = vld [vmem:[%s451_s2] ss:$0 sm:$0xff]  ;;  %236 = vmatpush.bf16.msra.mxu3 %v327_v19  ;;  %v323_v29 = vld [vmem:[%s456_s7 + $0x8] sm:$0xff] }
   0x6   :  { %v56_v5 = vsel %vm54_vm0, %v48_v3, 0  ;;  %118 = vmatpush.bf16.msra.mxu1 %v317_v4  ;;  %v319_v18 = vld [vmem:[%s455_s5] sm:$0xff] }
   0x7   :  { %64 = vmatpush.bf16.msra.mxu0 %v56_v5  ;;  %166 = vmatpush.bf16.msra.mxu2 %v320_v17  ;;  %v326_v20 = vld [vmem:[%s456_s7 + $0x20] sm:$0xff] }
   0x8   :  { %v329_v21 = vld [vmem:[%s453_s4] ss:$0 sm:$0xff] }
   0x9   :  { %237 = vmatpush.bf16.msra.mxu3 %v326_v20  ;;  %v322_v30 = vld [vmem:[%s456_s7] sm:$0xff] }
   0xa   :  { %119 = vmatpush.bf16.msra.mxu1 %v316_v8  ;;  %v330_v31 = vld [vmem:[%s454_s6] ss:$0 sm:$0xff] }
   0xb   :  { %65 = vmatpush.bf16.msra.mxu0 %v314_v6  ;;  %167 = vmatpush.bf16.msra.mxu2 %v319_v18  ;;  %v331_v40 = vld [vmem:[%s457_s8] ss:$0 sm:$0xff] }
   0xd   :  { %238 = vmatpush.bf16.msra.mxu3 %v325_v27 }
   0xe   :  { %258 = vmatmul.msk.bf16.vlgmr.msra.gmra.mxu0 %vm50_vm1, %v33_v7  ;;  %120 = vmatpush.bf16.msra.mxu1 %v315_v9 }
  0x11   :  { %239 = vmatpush.bf16.msra.mxu3 %v324_v28 }
  0x15   :  { %240 = vmatpush.bf16.msra.mxu3 %v323_v29 }
  0x19   :  { %241 = vmatpush.bf16.msra.mxu3 %v322_v30 }
  0x8b   :  { %v67_v11 = vpop.f32.mrf.mxu0 }
  0x8c   :  { %v68_v12 = vadd.f32 %v328_v10, %v67_v11 }
  0x8e   :  { %v71_v13 = vmax.f32 %v68_v12, 0.0 }
  0x90   :  { %v72_v14 = vpack.c.bf16 %v71_v13, %v71_v13 }
  0x92   :  { %275 = vmatmul.msk.bf16.vlgmr.msra.gmra.mxu1 %vm109_vm2, %v72_v14 }
  0x93   :  { %v69_v15 = vpop.f32.mrf.mxu0 }
 0x10f   :  { %v122_v22 = vpop.f32.mrf.mxu1 }
 0x110   :  { %v123_v23 = vadd.f32 %v329_v21, %v122_v22 }
 0x112   :  { %332 = vtanh.f32 %v123_v23 }
 0x117   :  { %v124_v24 = vpop.f32.mrf.mxu1 }
 0x118   :  { %v333_v25 = vpop.eup %332 }
 0x119   :  { %v127_v26 = vpack.c.bf16 %v333_v25, %v333_v25 }
 0x11b   :  { %288 = vmatmul.msk.bf16.vlgmr.msra.gmra.mxu2 %vm156_vm3, %v127_v26 }
 0x19e   :  { %v169_v32 = vpop.f32.mrf.mxu2 }
 0x19f   :  { %v170_v33 = vadd.f32 %v330_v31, %v169_v32 }
 0x1a1   :  { %v173_v34 = vmul.f32 0.5, %v170_v33 }
 0x1a3   :  { %334 = vtanh.f32 %v173_v34 }
 0x1a6   :  { %v171_v35 = vpop.f32.mrf.mxu2 }
 0x1a9   :  { %v335_v36 = vpop.eup %334 }
 0x1aa   :  { %v175_v37 = vadd.f32 1.0, %v335_v36 }
 0x1ac   :  { %v176_v38 = vmul.f32 0.5, %v175_v37 }
 0x1ae   :  { %v177_v39 = vpack.c.bf16 %v176_v38, %v176_v38 }
 0x1b0   :  { %313 = vmatmul.msk.bf16.vlgmr.msra.gmra.mxu3 %vm230_vm4, %v177_v39 }
 0x233   :  { %v243_v41 = vpop.f32.mrf.mxu3 }
 0x234   :  { %v244_v42 = vadd.f32 %v331_v40, %v243_v41 }
 0x236   :  { %v247_v43 = vpack.c.bf16 %v244_v42, %v244_v42 }
 0x238   :  { %249 = vst.msk [vmem:[%s458_s9] sm:$0xf] %vm248_vm5, %v247_v43 }
 0x23b   :  { %v245_v44 = vpop.f32.mrf.mxu3 }

</bundles_post_ra>
